<compile_context>
chip_gen: v7x
topology: tpu7x:2x2x1
jax: 0.10.0
libtpu: 0.0.40
codegen_flags: <defaults>
</compile_context>

<pallas_src>
import math
import functools

import jax
import jax.numpy as jnp
from jax import lax
from jax.experimental import pallas as pl
from jax.experimental.pallas import tpu as pltpu


# ----------------------------------------------------------------------------
# Parameter setup (equivalent of __init__): deterministic sin/cos table.
# ----------------------------------------------------------------------------
def make_positional_encoding(d_model: int, max_len: int = 5000) -> jnp.ndarray:
    position = jnp.arange(max_len, dtype=jnp.float32)[:, None]          # [L, 1]
    div_term = jnp.exp(
        jnp.arange(0, d_model, 2, dtype=jnp.float32)
        * (-math.log(10000.0) / d_model)
    )                                                                    # [D/2]
    pe = jnp.zeros((max_len, d_model), dtype=jnp.float32)
    pe = pe.at[:, 0::2].set(jnp.sin(position * div_term))
    pe = pe.at[:, 1::2].set(jnp.cos(position * div_term))
    return pe[None, :, :]                                                # [1, L, D]


# ----------------------------------------------------------------------------
# Counter-based hash (splitmix32 finalizer) -- pure uint32 VPU ops.
# ----------------------------------------------------------------------------
def _mix32(u):
    u = u ^ (u >> jnp.uint32(16))
    u = u * jnp.uint32(0x7FEB352D)
    u = u ^ (u >> jnp.uint32(15))
    u = u * jnp.uint32(0x846CA68B)
    u = u ^ (u >> jnp.uint32(16))
    return u


# ----------------------------------------------------------------------------
# Pallas kernel: y = dropout(x + pe)
#   x_ref / o_ref : (B, TL)  tile of the flattened [B, S*D] activations
#   pe_ref        : (1, TL)  matching tile of the flattened pe (broadcast on B)
# ----------------------------------------------------------------------------
def _pe_dropout_kernel(seed_ref, x_ref, pe_ref, o_ref, *, p, training,
                       total_n, tile_n):
    y = x_ref[...] + pe_ref[...]                       # (B, TL), no upcast

    if training and p > 0.0:
        if p >= 1.0:
            y = jnp.zeros_like(y)
        else:
            bsz, tl = y.shape
            t = pl.program_id(0)
            # Unique per-element counter: batch * N + flat_position.
            pos = t * tile_n + lax.broadcasted_iota(jnp.int32, (bsz, tl), 1)
            bidx = lax.broadcasted_iota(jnp.int32, (bsz, tl), 0)
            ctr = (bidx.astype(jnp.uint32) * jnp.uint32(total_n)
                   + pos.astype(jnp.uint32))
            seed_u = seed_ref[0].astype(jnp.uint32)
            u = ctr + seed_u * jnp.uint32(0x9E3779B9)
            u = _mix32(u)
            u = _mix32(u ^ jnp.uint32(0x85EBCA6B))
            # Uniform [0, 1) from the top 24 bits (exact in f32).
            uf = ((u >> jnp.uint32(8)).astype(jnp.int32).astype(jnp.float32)
                  * jnp.float32(1.0 / 16777216.0))
            keep = uf >= jnp.float32(p)                # keep prob = 1 - p
            scale = jnp.asarray(1.0 / (1.0 - p), dtype=y.dtype)
            y = jnp.where(keep, y * scale, jnp.zeros_like(y))

    o_ref[...] = y.astype(o_ref.dtype)


# ----------------------------------------------------------------------------
# Tile-size selection: largest multiple of 128 dividing N with the x tile
# (B * TL * itemsize) staying around ~2 MiB -> deep grid, double-buffers fit
# comfortably inside v7x's smaller scoped VMEM as well as v5e/v6e.
# ----------------------------------------------------------------------------
def _choose_tile(n, b, itemsize, max_tile_bytes=2 * 1024 * 1024):
    if n % 128 != 0:
        return n                                   # full-extent block fallback
    max_elems = max(128, max_tile_bytes // max(1, b * itemsize))
    m = n // 128
    best = 128
    d = 1
    while d * d <= m:
        if m % d == 0:
            for q in (d, m // d):
                cand = q * 128
                if best < cand <= max_elems:
                    best = cand
        d += 1
    return best


# ----------------------------------------------------------------------------
# Wrapper
# ----------------------------------------------------------------------------
def positional_encoding_forward(x, pe, *, p=0.1, training=True, seed=0):
    """x: [B, S, D]; pe: [1, max_len, D] float32 table."""
    B, S, D = x.shape
    N = S * D

    # Elementwise op -> flatten to a lane-dense [B, N] slab (free reshape).
    x2 = x.reshape(B, N)
    pe2 = pe[:, :S, :].astype(x.dtype).reshape(1, N)
    seed_arr = jnp.array([seed], dtype=jnp.int32)

    TL = _choose_tile(N, B, jnp.dtype(x.dtype).itemsize)
    grid = (N // TL,)

    kernel = functools.partial(
        _pe_dropout_kernel,
        p=float(p), training=bool(training), total_n=N, tile_n=TL,
    )

    grid_spec = pltpu.PrefetchScalarGridSpec(
        num_scalar_prefetch=1,
        grid=grid,
        in_specs=[
            pl.BlockSpec((B, TL), lambda t, seed: (0, t)),   # x tile (all batches)
            pl.BlockSpec((1, TL), lambda t, seed: (0, t)),   # pe tile
        ],
        out_specs=pl.BlockSpec((B, TL), lambda t, seed: (0, t)),
    )

    out2 = pl.pallas_call(
        kernel,
        out_shape=jax.ShapeDtypeStruct((B, N), x.dtype),
        grid_spec=grid_spec,
        compiler_params=pltpu.CompilerParams(
            dimension_semantics=("parallel",),       # independent tiles (v7x 2 TC)
            vmem_limit_bytes=32 * 1024 * 1024,
        ),
    )(seed_arr, x2, pe2)

    return out2.reshape(B, S, D)


# ----------------------------------------------------------------------------
# Demo / smoke test
# ----------------------------------------------------------------------------
if __name__ == "__main__":
    B, S, D = 2, 8, 32
    max_len = 64
    p = 0.1

    key = jax.random.PRNGKey(0)
    x = jax.random.normal(key, (B, S, D), dtype=jnp.float32)
    pe = make_positional_encoding(D, max_len)

    # Eval mode (dropout disabled): must equal x + pe[:, :S, :].
    y_eval = jax.block_until_ready(
        positional_encoding_forward(x, pe, p=p, training=False))
    ref = x + pe[:, :S, :]
    assert jnp.allclose(y_eval, ref, atol=1e-6), "eval-mode mismatch"

    # Training mode: every output element is either 0 or (x+pe)/(1-p).
    y_train = jax.block_until_ready(
        positional_encoding_forward(x, pe, p=p, training=True, seed=123))
    assert y_train.shape == (B, S, D)
    scaled = ref / (1.0 - p)
    ok = (jnp.isclose(y_train, 0.0, atol=1e-6)
          | jnp.isclose(y_train, scaled, rtol=1e-5, atol=1e-6))
    assert bool(jnp.all(ok)), "training-mode values outside {0, scaled}"

    # TODO(synk): dropout uses a counter-based hash PRNG, so the exact mask
    # differs from torch's RNG stream (distribution/semantics are identical).

    print("KERNEL_OK")
</pallas_src>

<mosaic_0001>
module attributes {stable_mosaic.version = 11 : i64} {
  func.func @_pe_dropout_kernel(%arg0: i32, %arg1: memref<1xi32, #tpu.memory_space<smem>>, %arg2: memref<2x256xf32, #tpu.memory_space<vmem>>, %arg3: memref<1x256xf32, #tpu.memory_space<vmem>>, %arg4: memref<2x256xf32, #tpu.memory_space<vmem>>) attributes {dimension_semantics = [#tpu.dimension_semantics<parallel>], iteration_bounds = array<i64: 1>, scalar_prefetch = 1 : i64, scratch_operands = 0 : i64, tpu.core_type = #tpu.core_type<tc>, window_params = [{transform_indices = @transform_0, window_bounds = array<i64: 2, 256>}, {transform_indices = @transform_1, window_bounds = array<i64: 1, 256>}, {transform_indices = @transform_2, window_bounds = array<i64: 2, 256>}]} {
    %c0 = arith.constant 0 : index
    %c0_0 = arith.constant 0 : index
    %0 = vector.load %arg2[%c0, %c0_0] : memref<2x256xf32, #tpu.memory_space<vmem>>, vector<2x256xf32>
    %c0_1 = arith.constant 0 : index
    %c0_2 = arith.constant 0 : index
    %1 = vector.load %arg3[%c0_1, %c0_2] : memref<1x256xf32, #tpu.memory_space<vmem>>, vector<1x256xf32>
    %2 = vector.broadcast %1 : vector<1x256xf32> to vector<2x256xf32>
    %3 = arith.addf %0, %2 : vector<2x256xf32>
    %c0_3 = arith.constant 0 : index
    %c0_4 = arith.constant 0 : index
    %4 = vector.load %arg4[%c0_3, %c0_4] : memref<2x256xf32, #tpu.memory_space<vmem>>, vector<2x256xf32>
    tpu.vector_store %arg4[%c0_3, %c0_4], %3 {strides = array<i32>} : memref<2x256xf32, #tpu.memory_space<vmem>>, vector<2x256xf32>,
    return
  }
  func.func @transform_0(%arg0: i32, %arg1: memref<1xi32, #tpu.memory_space<smem>>) -> (i32, i32) {
    %c0_i32 = arith.constant 0 : i32
    %c0_i32_0 = arith.constant 0 : i32
    return %c0_i32, %arg0 : i32, i32
  }
  func.func @transform_1(%arg0: i32, %arg1: memref<1xi32, #tpu.memory_space<smem>>) -> (i32, i32) {
    %c0_i32 = arith.constant 0 : i32
    %c0_i32_0 = arith.constant 0 : i32
    return %c0_i32, %arg0 : i32, i32
  }
  func.func @transform_2(%arg0: i32, %arg1: memref<1xi32, #tpu.memory_space<smem>>) -> (i32, i32) {
    %c0_i32 = arith.constant 0 : i32
    %c0_i32_0 = arith.constant 0 : i32
    return %c0_i32, %arg0 : i32, i32
  }
}

</mosaic_0001>

<bundles_post_ra>
// kernel: tpu_custom_call.1
= control target key start
LH: loop header
LB: loop body
LE: loop exit
PB: predicated region body
PF: predicated region fallthrough
CT: control target
= control target key end

     0   :  { %9 = vsyncpa [#allocation5], 0  ;;  %s164_s0 = inlined_call_operand.<no memory space> [shape: s32[1], index: 0, kind: input, shape index: {}]   ;;  %s165_s1 = inlined_call_operand.hbm [shape: f32[2,256], index: 1, kind: input, shape index: {}]   ;;  %s166_s2 = inlined_call_operand.vmem [shape: f32[1,256], index: 2, kind: input, shape index: {}]   ;;  %s167_s3 = inlined_call_operand.hbm [shape: f32[2,256], index: 3, kind: output, shape index: {}]  }
   0x1   :  { %10 = vsyncpa [#allocation6], 0  ;;  %s114_s12 = smov [#allocation4]   ;;  %s66_s16 = scalar_lea.hbm %s165_s1, 64 }
   0x2   :  { %s17_s13 = sshll.u32 %s114_s12, 4  ;;  %p67_p0 = scmp.ne.s32.totalorder %s165_s1, %s66_s16  ;;  %s18_s13 = int_to_ptr.vmem [resolvable:$true] %s17_s13 }
   0x3   :  { %p70_p1 = scmp.lt.u32.totalorder %s66_s16, %s165_s1 }
   0x5   :  { %p72_p2 = pnand %p70_p1, %p67_p0 }
   0x7   :  { %75 = shalt.err (!%p72_p2)
}
   0x8   :  { %s76_s20 = scalar_lea.vmem %s18_s13, 64  ;;  %p81_p4 = scmp.lt.s32.totalorder %s18_s13, %s18_s13 }
   0x9   :  { %p77_p3 = scmp.ne.s32.totalorder %s18_s13, %s76_s20  ;;  %p82_p5 = scmp.lt.s32.totalorder %s76_s20, %s76_s20 }
   0xb   :  { %p83_p6 = por %p82_p5, %p81_p4 }
   0xd   :  { %p84_p7 = pnand %p83_p6, %p77_p3 }
   0xf   :  { %87 = shalt.err (!%p84_p7)
}
  0x10   :  { %20 = dma.hbm_to_vmem [thread:$0]  %s165_s1, 64, %s18_s13, [#allocation5]  }
  0x11   :  { %110 = dma.done.wait [#allocation5], 64  }
  0x12   :  { %111 = vsyncadd [#allocation5], 4294967232  ;;  %v29_v0 = vlaneseq  ;;  %v115_v1 = vmov 1983009808   ;;  %v27_v7 = vld [vmem:[%s166_s2] sm:$0x3] }
  0x13   :  { %v39_v2 = vunpack.c.l.s4 %v115_v1  ;;  %v26_v12 = vld [vmem:[#allocation4] sm:$0xf]  ;;  %s116_s25 = smov [#allocation7]  }
  0x14   :  { %v30_v3 = vshrl.u32 %v29_v0, 7  ;;  %s54_s1 = sshll.u32 %s116_s25, 4  ;;  %s55_s1 = int_to_ptr.vmem [resolvable:$true] %s54_s1 }
  0x15   :  { %v40_v6 = vunpack.c.0.s8 %v39_v2  ;;  %s88_s26 = scalar_lea.vmem %s55_s1, 64  ;;  %p93_p9 = scmp.lt.s32.totalorder %s55_s1, %s55_s1 }
  0x16   :  { %v31_v4 = vsub.s32 0, %v30_v3  ;;  %v35_v5 = vsub.s32 1, %v30_v3  ;;  %p89_p8 = scmp.ne.s32.totalorder %s55_s1, %s88_s26  ;;  %p94_p10 = scmp.lt.s32.totalorder %s88_s26, %s88_s26 }
  0x17   :  { %v43_v10 = vsub.s32 %v40_v6, %v30_v3 }
  0x18   :  { %v32_v8 = vrot.slane %v27_v7, %v31_v4  ;;  %v36_v9 = vrot.slane %v27_v7, %v35_v5  ;;  %p95_p11 = por %p94_p10, %p93_p9 }
  0x1a   :  { %v37_v11 = vcombine.low %v32_v8, %v36_v9  ;;  %p96_p12 = pnand %p95_p11, %p89_p8 }
  0x1c   :  { %v44_v13 = vrot.slane %v37_v11, %v43_v10 }
  0x1e   :  { %v46_v14 = vadd.f32 %v44_v13, %v26_v12 }
  0x20   :  { %47 = vst [vmem:[#allocation7] sm:$0xf] %v46_v14 }
  0x21   :  { %99 = shalt.err (!%p96_p12)
}
  0x22   :  { %s100_s28 = scalar_lea.hbm %s167_s3, 64 }
  0x23   :  { %p101_p13 = scmp.ne.s32.totalorder %s167_s3, %s100_s28  ;;  %p104_p0 = scmp.lt.u32.totalorder %s100_s28, %s167_s3 }
  0x25   :  { %p106_p1 = pnand %p104_p0, %p101_p13 }
  0x27   :  { %109 = shalt.err (!%p106_p1)
}
  0x28   :  { %57 = dma.vmem_to_hbm [thread:$0]  %s55_s1, 64, %s167_s3, [#allocation6]  }
  0x29   :  { %112 = dma.done.wait [#allocation6], 64  }
  0x2a   :  { %113 = vsyncadd [#allocation6], 4294967232 }
  0x2b   :  { %61 = vsyncpa [#allocation5], 1 }
  0x2c   :  { %62 = vsyncpa [#allocation6], 1 }

</bundles_post_ra>
